<compile_context>
chip_gen: v5e
topology: v5e:2x2
jax: 0.10.0
libtpu: 0.0.40
codegen_flags: <defaults>
</compile_context>

<pallas_src>
import functools

import jax
import jax.numpy as jnp
from jax import lax
from jax.experimental import pallas as pl
from jax.experimental.pallas import tpu as pltpu

EPS = 1e-8
NEG_SLOPE = 0.2
_SLACK_BYTES = 2 << 20          # small operands, semaphores, Mosaic scratch
_MIN_VMEM_LIMIT = 16 << 20


# ----------------------------------------------------------------------------
# Helpers
# ----------------------------------------------------------------------------
def _round_up(v, m):
    return ((v + m - 1) // m) * m


def _cdiv(a, b):
    return (a + b - 1) // b


def _vmem_ceiling():
    """Generation-aware usable-VMEM ceiling (bytes): ~85% of physical VMEM."""
    cap = 64 << 20                                    # conservative fallback (v7x)
    try:
        cap = int(pltpu.get_tpu_info().vmem_capacity_bytes)
    except Exception:
        pass
    return min(int(cap * 0.85), cap - (8 << 20))


def _tile_bytes(c_pad, t, isz, osz, with_out):
    """VMEM for one (C, t) tile: double-buffered x + noise (+ out) pipeline
    copies plus an f32-sized in-kernel y temporary and one transient."""
    b = 2 * (c_pad * t * isz + t * isz)               # x, noise (double-buffered)
    if with_out:
        b += 2 * c_pad * t * osz                      # out (double-buffered)
    b += 2 * c_pad * t * 4                            # f32 y + one transient
    return b


# ----------------------------------------------------------------------------
# Kernels
# ----------------------------------------------------------------------------
def _prefix(x_ref, noise_ref, nw_ref, use_noise, use_pixel_norm, compute_dtype):
    """noise-add + leakyReLU + PixelNorm on one (C, t) tile."""
    y = x_ref[0].astype(compute_dtype)                                 # (C, t)
    if use_noise:
        y = y + nw_ref[...].astype(compute_dtype) * noise_ref[0].astype(compute_dtype)
    y = jnp.where(y >= 0, y, NEG_SLOPE * y)                            # LeakyReLU(0.2)
    if use_pixel_norm:                                                 # over channels
        yf = y.astype(jnp.float32)
        y = (yf * lax.rsqrt(jnp.mean(yf * yf, axis=0, keepdims=True) + EPS)
             ).astype(compute_dtype)
    return y


def _fused_kernel(x_ref, noise_ref, nw_ref, scale_ref, bias_ref, out_ref, *,
                  use_noise, use_pixel_norm, use_instance_norm, compute_dtype):
    """Single-pass kernel: whole (C, S) slab for one batch element."""
    y = _prefix(x_ref, noise_ref, nw_ref, use_noise, use_pixel_norm, compute_dtype)
    a = scale_ref[0].astype(jnp.float32)              # (C, 1) = style scale + 1
    b = bias_ref[0].astype(jnp.float32)               # (C, 1) = style bias
    if use_instance_norm:
        yf = y.astype(jnp.float32)
        mu = jnp.mean(yf, axis=1, keepdims=True)      # (C, 1)
        ex2 = jnp.mean(yf * yf, axis=1, keepdims=True)
        var = jnp.maximum(ex2 - mu * mu, 0.0)
        inv = lax.rsqrt(var + EPS)
        a = inv * a                                   # fold InstanceNorm into style
        b = b - mu * a
    out_ref[0] = (y * a.astype(compute_dtype) + b.astype(compute_dtype)
                  ).astype(out_ref.dtype)             # single apply sweep


def _stats_kernel(x_ref, noise_ref, nw_ref, sum_ref, sq_ref, *,
                  true_s, tile_s, n_half_blocks, split, use_noise,
                  use_pixel_norm, compute_dtype):
    """S-tiled pass 1: accumulate per-channel sum / sumsq of the prefixed y."""
    i = pl.program_id(0)                              # fused (batch, S-half) axis
    s = pl.program_id(1)                              # reduction over spatial tiles

    @pl.when(s == 0)
    def _():
        sum_ref[...] = jnp.zeros_like(sum_ref)
        sq_ref[...] = jnp.zeros_like(sq_ref)

    y = _prefix(x_ref, noise_ref, nw_ref, use_noise, use_pixel_norm,
                compute_dtype).astype(jnp.float32)
    # Mask lanes past the true spatial extent (ragged last tile) and the
    # duplicated tiles created by the 2-way S split when the tile count is odd.
    off = ((i % split) * n_half_blocks + s) * tile_s
    pos = off + lax.broadcasted_iota(jnp.int32, y.shape, 1)
    y = jnp.where(pos < true_s, y, 0.0)
    sum_ref[0] = sum_ref[0] + jnp.sum(y, axis=1, keepdims=True)
    sq_ref[0] = sq_ref[0] + jnp.sum(y * y, axis=1, keepdims=True)


def _apply_kernel(x_ref, noise_ref, nw_ref, a_ref, b_ref, out_ref, *,
                  use_noise, use_pixel_norm, compute_dtype):
    """S-tiled pass 2: recompute cheap prefix and emit one out = y*a + b sweep.

    No tail mask needed: there is no cross-lane mixing, so out-of-bounds input
    lanes only affect out-of-bounds output lanes, whose writes Pallas discards.
    """
    y = _prefix(x_ref, noise_ref, nw_ref, use_noise, use_pixel_norm, compute_dtype)
    out_ref[0] = (y * a_ref[0].astype(compute_dtype)
                  + b_ref[0].astype(compute_dtype)).astype(out_ref.dtype)


# ----------------------------------------------------------------------------
# Wrapper
# ----------------------------------------------------------------------------
def adain_forward(x, noise, latent, noise_weight, fc_w, fc_b,
                  use_noise=True, use_pixel_norm=True, use_instance_norm=True,
                  vmem_budget_bytes=None):
    N, C, D, H, W = x.shape
    S = D * H * W
    L = latent.shape[-1]
    out_dtype = x.dtype
    isz = jnp.dtype(x.dtype).itemsize
    osz = isz

    # bf16 elementwise compute when inputs are bf16 (native VPU on v6e/v7x);
    # all reductions / stats / rsqrt stay in f32.  f32 inputs -> f32 compute.
    compute_dtype = jnp.bfloat16 if x.dtype == jnp.bfloat16 else jnp.float32

    ceiling = _vmem_ceiling()
    budget = ceiling if vmem_budget_bytes is None else int(vmem_budget_bytes)

    # Lane-dense 3-D views (free reshapes: no HBM copy, no padding pass).
    x3 = x.reshape(N, C, S)
    noise3 = noise.reshape(N, 1, S)
    nw = noise_weight.reshape(C, 1).astype(jnp.float32)

    # Hoisted ApplyStyle FC: one (N,L)x(L,2C) matmul in XLA (wscale folded in W).
    style = (latent.reshape(N, L).astype(jnp.float32) @ fc_w.astype(jnp.float32)
             + fc_b.reshape(1, 2 * C).astype(jnp.float32))             # (N, 2C)
    scale = style[:, :C] + 1.0                                         # (N, C)
    sbias = style[:, C:]                                               # (N, C)

    # VMEM accounting uses the padded in-VMEM layout footprint of a tile.
    C_pad = _round_up(C, 8)
    S_lane = _round_up(S, 128)
    fused_need = _tile_bytes(C_pad, S_lane, isz, osz, True) + _SLACK_BYTES

    if fused_need <= budget:
        # ------ single fused pass: 1 read + 1 write of x ----------------------
        vmem_limit = min(max(fused_need, _MIN_VMEM_LIMIT), ceiling)
        kernel = functools.partial(
            _fused_kernel, use_noise=use_noise, use_pixel_norm=use_pixel_norm,
            use_instance_norm=use_instance_norm, compute_dtype=compute_dtype)
        # TODO(synk): with N == 1 this single-iteration grid keeps one v7x
        # TensorCore idle; a clean split would need a cross-core stats exchange.
        out = pl.pallas_call(
            kernel,
            out_shape=jax.ShapeDtypeStruct((N, C, S), out_dtype),
            grid_spec=pltpu.PrefetchScalarGridSpec(
                num_scalar_prefetch=0,
                grid=(N,),
                in_specs=[
                    pl.BlockSpec((1, C, S), lambda n: (n, 0, 0)),      # x
                    pl.BlockSpec((1, 1, S), lambda n: (n, 0, 0)),      # noise
                    pl.BlockSpec((C, 1), lambda n: (0, 0)),            # noise weight
                    pl.BlockSpec((1, C, 1), lambda n: (n, 0, 0)),      # style scale+1
                    pl.BlockSpec((1, C, 1), lambda n: (n, 0, 0)),      # style bias
                ],
                out_specs=pl.BlockSpec((1, C, S), lambda n: (n, 0, 0)),
            ),
            compiler_params=pltpu.CompilerParams(
                dimension_semantics=("parallel",),
                vmem_limit_bytes=vmem_limit),
        )(x3, noise3, nw, scale.reshape(N, C, 1), sbias.reshape(N, C, 1))
        return out.reshape(N, C, D, H, W)

    # ------ S-tiled two-pass path: 2 reads + 1 write of x ---------------------
    # Largest multiple-of-128 spatial tile that fits the budget (no requirement
    # that it divide S; the ragged last tile is handled in-kernel).
    per_t = _tile_bytes(C_pad, 1, isz, osz, True)
    avail = max(budget - _SLACK_BYTES, 0)
    tS = max(128, min((avail // per_t) // 128 * 128, S_lane))
    nS = _cdiv(S, tS)
    need = _tile_bytes(C_pad, tS, isz, osz, True) + _SLACK_BYTES
    vmem_limit = min(max(need, _MIN_VMEM_LIMIT), ceiling)

    if use_instance_norm:
        # Split S in two halves on the leading "parallel" axis so both v7x
        # TensorCores get work even for N == 1; combine partial sums in XLA.
        split = 2 if nS >= 2 else 1
        nS2 = _cdiv(nS, split)

        def _big_map(i, s):
            b = jnp.minimum((i % split) * nS2 + s, nS - 1)   # clamp duplicates
            return (i // split, 0, b)

        stats_kernel = functools.partial(
            _stats_kernel, true_s=S, tile_s=tS, n_half_blocks=nS2, split=split,
            use_noise=use_noise, use_pixel_norm=use_pixel_norm,
            compute_dtype=compute_dtype)
        ssum, ssq = pl.pallas_call(
            stats_kernel,
            out_shape=(jax.ShapeDtypeStruct((split * N, C, 1), jnp.float32),
                       jax.ShapeDtypeStruct((split * N, C, 1), jnp.float32)),
            grid_spec=pltpu.PrefetchScalarGridSpec(
                num_scalar_prefetch=0,
                grid=(split * N, nS2),
                in_specs=[
                    pl.BlockSpec((1, C, tS), _big_map),                 # x
                    pl.BlockSpec((1, 1, tS), _big_map),                 # noise
                    pl.BlockSpec((C, 1), lambda i, s: (0, 0)),          # noise weight
                ],
                out_specs=[
                    pl.BlockSpec((1, C, 1), lambda i, s: (i, 0, 0)),    # sum
                    pl.BlockSpec((1, C, 1), lambda i, s: (i, 0, 0)),    # sumsq
                ],
            ),
            compiler_params=pltpu.CompilerParams(
                dimension_semantics=("parallel", "arbitrary"),
                vmem_limit_bytes=vmem_limit),
        )(x3, noise3, nw)

        # Tiny finalize in XLA: combine halves, fold InstanceNorm into style a/b.
        ssum = ssum.reshape(N, split, C).sum(axis=1)
        ssq = ssq.reshape(N, split, C).sum(axis=1)
        mu = ssum / float(S)                                            # (N, C)
        var = jnp.maximum(ssq / float(S) - mu * mu, 0.0)
        inv = lax.rsqrt(var + EPS)
        a = inv * scale
        b = sbias - mu * a
    else:
        a, b = scale, sbias

    apply_kernel = functools.partial(
        _apply_kernel, use_noise=use_noise, use_pixel_norm=use_pixel_norm,
        compute_dtype=compute_dtype)
    out = pl.pallas_call(
        apply_kernel,
        out_shape=jax.ShapeDtypeStruct((N, C, S), out_dtype),
        grid_spec=pltpu.PrefetchScalarGridSpec(
            num_scalar_prefetch=0,
            grid=(N, nS),
            in_specs=[
                pl.BlockSpec((1, C, tS), lambda n, s: (n, 0, s)),       # x
                pl.BlockSpec((1, 1, tS), lambda n, s: (n, 0, s)),       # noise
                pl.BlockSpec((C, 1), lambda n, s: (0, 0)),              # noise weight
                pl.BlockSpec((1, C, 1), lambda n, s: (n, 0, 0)),        # a
                pl.BlockSpec((1, C, 1), lambda n, s: (n, 0, 0)),        # b
            ],
            out_specs=pl.BlockSpec((1, C, tS), lambda n, s: (n, 0, s)),
        ),
        compiler_params=pltpu.CompilerParams(
            dimension_semantics=("parallel", "parallel"),
            vmem_limit_bytes=vmem_limit),
    )(x3, noise3, nw,
      a.reshape(N, C, 1).astype(jnp.float32),
      b.reshape(N, C, 1).astype(jnp.float32))

    return out.reshape(N, C, D, H, W)


# ----------------------------------------------------------------------------
# Pure-JAX reference mirroring the PyTorch module
# ----------------------------------------------------------------------------
def adain_ref(x, noise, latent, noise_weight, fc_w, fc_b,
              use_noise=True, use_pixel_norm=True, use_instance_norm=True):
    if use_noise:
        x = x + noise_weight.reshape(1, -1, 1, 1, 1) * noise
    x = jnp.where(x >= 0, x, NEG_SLOPE * x)
    if use_pixel_norm:
        x = x * lax.rsqrt(jnp.mean(x * x, axis=1, keepdims=True) + EPS)
    if use_instance_norm:
        x = x - jnp.mean(x, axis=(2, 3, 4), keepdims=True)
        x = x * lax.rsqrt(jnp.mean(x * x, axis=(2, 3, 4), keepdims=True) + EPS)
    style = latent @ fc_w + fc_b                                       # (N, 2C)
    N, C = x.shape[0], x.shape[1]
    style = style.reshape(N, 2, C, 1, 1, 1)
    return x * (style[:, 0] + 1.0) + style[:, 1]


# ----------------------------------------------------------------------------
# Test
# ----------------------------------------------------------------------------
if __name__ == "__main__":
    def make_inputs(key, N, C, D, H, W, L):
        k1, k2, k3, k4, k5, k6 = jax.random.split(key, 6)
        x = jax.random.normal(k1, (N, C, D, H, W), jnp.float32)
        noise = jax.random.normal(k2, (N, 1, D, H, W), jnp.float32)
        latent = jax.random.normal(k3, (N, L), jnp.float32)
        noise_weight = 0.1 * jax.random.normal(k4, (C,), jnp.float32)
        # FC(dlatent_size, 2*num_feature) with use_wscale: he_std folded into W.
        fc_w = jax.random.normal(k5, (L, 2 * C), jnp.float32) * (1.0 / jnp.sqrt(float(L)))
        fc_b = 0.01 * jax.random.normal(k6, (2 * C,), jnp.float32)
        return x, noise, latent, noise_weight, fc_w, fc_b

    root = jax.random.PRNGKey(0)
    key_a, key_b = jax.random.split(root)

    args = make_inputs(key_a, 2, 4, 4, 8, 8, 32)       # S = 256 (lane-aligned)
    args_odd = make_inputs(key_b, 2, 4, 3, 5, 7, 32)   # S = 105 (ragged tail, no pad)

    checks = [
        (args, {}),                                      # fused single-pass path
        (args_odd, {}),                                  # fused path, unaligned S
        (args, {"vmem_budget_bytes": 64 * 1024}),        # forced S-tiled two-pass path
        (args_odd, {"vmem_budget_bytes": 64 * 1024}),    # tiled path, ragged last tile
        (args, {"vmem_budget_bytes": 64 * 1024,
                "use_instance_norm": False}),            # tiled path, no InstanceNorm
        (args, {"use_pixel_norm": False}),               # fused path, no PixelNorm
    ]

    for i, (a, kw) in enumerate(checks):
        out = jax.block_until_ready(adain_forward(*a, **kw))
        ref_kw = {k: v for k, v in kw.items() if k != "vmem_budget_bytes"}
        ref = adain_ref(*a, **ref_kw)
        err = float(jnp.max(jnp.abs(out - ref)))
        assert jnp.allclose(out, ref, atol=3e-5, rtol=3e-5), (i, err)

    print("KERNEL_OK")
</pallas_src>

<mosaic_0001>
module attributes {stable_mosaic.version = 11 : i64} {
  func.func @_fused_kernel(%arg0: i32, %arg1: memref<1x4x256xf32, #tpu.memory_space<vmem>>, %arg2: memref<1x1x256xf32, #tpu.memory_space<vmem>>, %arg3: memref<4x1xf32, #tpu.memory_space<vmem>>, %arg4: memref<1x4x1xf32, #tpu.memory_space<vmem>>, %arg5: memref<1x4x1xf32, #tpu.memory_space<vmem>>, %arg6: memref<1x4x256xf32, #tpu.memory_space<vmem>>) attributes {dimension_semantics = [#tpu.dimension_semantics<parallel>], iteration_bounds = array<i64: 2>, scalar_prefetch = 0 : i64, scratch_operands = 0 : i64, tpu.core_type = #tpu.core_type<tc>, window_params = [{transform_indices = @transform_0, window_bounds = array<i64: 1, 4, 256>}, {transform_indices = @transform_1, window_bounds = array<i64: 1, 1, 256>}, {pipeline_mode = #tpu.pipeline_mode<synchronous>, transform_indices = @transform_2, window_bounds = array<i64: 4, 1>}, {transform_indices = @transform_3, window_bounds = array<i64: 1, 4, 1>}, {transform_indices = @transform_4, window_bounds = array<i64: 1, 4, 1>}, {transform_indices = @transform_5, window_bounds = array<i64: 1, 4, 256>}]} {
    %c0 = arith.constant 0 : index
    %c0_0 = arith.constant 0 : index
    %c0_1 = arith.constant 0 : index
    %0 = vector.load %arg1[%c0, %c0_0, %c0_1] : memref<1x4x256xf32, #tpu.memory_space<vmem>>, vector<1x4x256xf32>
    %1 = vector.shape_cast %0 : vector<1x4x256xf32> to vector<4x256xf32>
    %c0_2 = arith.constant 0 : index
    %c0_3 = arith.constant 0 : index
    %2 = vector.load %arg3[%c0_2, %c0_3] : memref<4x1xf32, #tpu.memory_space<vmem>>, vector<4x1xf32>
    %c0_4 = arith.constant 0 : index
    %c0_5 = arith.constant 0 : index
    %c0_6 = arith.constant 0 : index
    %3 = vector.load %arg2[%c0_4, %c0_5, %c0_6] : memref<1x1x256xf32, #tpu.memory_space<vmem>>, vector<1x1x256xf32>
    %4 = vector.shape_cast %3 : vector<1x1x256xf32> to vector<1x256xf32>
    %5 = vector.broadcast %2 : vector<4x1xf32> to vector<4x256xf32>
    %6 = vector.broadcast %4 : vector<1x256xf32> to vector<4x256xf32>
    %7 = arith.mulf %5, %6 : vector<4x256xf32>
    %8 = arith.addf %1, %7 : vector<4x256xf32>
    %cst = arith.constant 0.000000e+00 : f32
    %9 = vector.broadcast %cst : f32 to vector<4x256xf32>
    %10 = arith.cmpf oge, %8, %9 : vector<4x256xf32>
    %cst_7 = arith.constant 2.000000e-01 : f32
    %11 = vector.broadcast %cst_7 : f32 to vector<4x256xf32>
    %12 = arith.mulf %11, %8 : vector<4x256xf32>
    %13 = arith.select %10, %8, %12 : vector<4x256xi1>, vector<4x256xf32>
    %14 = arith.mulf %13, %13 : vector<4x256xf32>
    %cst_8 = arith.constant dense<0.000000e+00> : vector<256xf32>
    %15 = vector.multi_reduction <add>, %14, %cst_8 [0] : vector<4x256xf32> to vector<256xf32>
    %16 = vector.shape_cast %15 : vector<256xf32> to vector<1x256xf32>
    %cst_9 = arith.constant 4.000000e+00 : f32
    %17 = vector.broadcast %cst_9 : f32 to vector<1x256xf32>
    %18 = arith.divf %16, %17 : vector<1x256xf32>
    %cst_10 = arith.constant 9.99999993E-9 : f32
    %19 = vector.broadcast %cst_10 : f32 to vector<1x256xf32>
    %20 = arith.addf %18, %19 : vector<1x256xf32>
    %21 = math.rsqrt %20 : vector<1x256xf32>
    %22 = vector.broadcast %21 : vector<1x256xf32> to vector<4x256xf32>
    %23 = arith.mulf %13, %22 : vector<4x256xf32>
    %c0_11 = arith.constant 0 : index
    %c0_12 = arith.constant 0 : index
    %c0_13 = arith.constant 0 : index
    %24 = vector.load %arg4[%c0_11, %c0_12, %c0_13] : memref<1x4x1xf32, #tpu.memory_space<vmem>>, vector<1x4x1xf32>
    %25 = vector.shape_cast %24 : vector<1x4x1xf32> to vector<4x1xf32>
    %c0_14 = arith.constant 0 : index
    %c0_15 = arith.constant 0 : index
    %c0_16 = arith.constant 0 : index
    %26 = vector.load %arg5[%c0_14, %c0_15, %c0_16] : memref<1x4x1xf32, #tpu.memory_space<vmem>>, vector<1x4x1xf32>
    %27 = vector.shape_cast %26 : vector<1x4x1xf32> to vector<4x1xf32>
    %cst_17 = arith.constant dense<0.000000e+00> : vector<4xf32>
    %28 = vector.multi_reduction <add>, %23, %cst_17 [1] : vector<4x256xf32> to vector<4xf32>
    %29 = vector.shape_cast %28 : vector<4xf32> to vector<4x1xf32>
    %cst_18 = arith.constant 2.560000e+02 : f32
    %30 = vector.broadcast %cst_18 : f32 to vector<4x1xf32>
    %31 = arith.divf %29, %30 : vector<4x1xf32>
    %32 = arith.mulf %23, %23 : vector<4x256xf32>
    %cst_19 = arith.constant dense<0.000000e+00> : vector<4xf32>
    %33 = vector.multi_reduction <add>, %32, %cst_19 [1] : vector<4x256xf32> to vector<4xf32>
    %34 = vector.shape_cast %33 : vector<4xf32> to vector<4x1xf32>
    %cst_20 = arith.constant 2.560000e+02 : f32
    %35 = vector.broadcast %cst_20 : f32 to vector<4x1xf32>
    %36 = arith.divf %34, %35 : vector<4x1xf32>
    %37 = arith.mulf %31, %31 : vector<4x1xf32>
    %38 = arith.subf %36, %37 : vector<4x1xf32>
    %cst_21 = arith.constant 0.000000e+00 : f32
    %39 = vector.broadcast %cst_21 : f32 to vector<4x1xf32>
    %40 = arith.maximumf %38, %39 : vector<4x1xf32>
    %cst_22 = arith.constant 9.99999993E-9 : f32
    %41 = vector.broadcast %cst_22 : f32 to vector<4x1xf32>
    %42 = arith.addf %40, %41 : vector<4x1xf32>
    %43 = math.rsqrt %42 : vector<4x1xf32>
    %44 = arith.mulf %43, %25 : vector<4x1xf32>
    %45 = arith.mulf %31, %44 : vector<4x1xf32>
    %46 = arith.subf %27, %45 : vector<4x1xf32>
    %47 = vector.broadcast %44 : vector<4x1xf32> to vector<4x256xf32>
    %48 = arith.mulf %23, %47 : vector<4x256xf32>
    %49 = vector.broadcast %46 : vector<4x1xf32> to vector<4x256xf32>
    %50 = arith.addf %48, %49 : vector<4x256xf32>
    %c0_23 = arith.constant 0 : index
    %c0_24 = arith.constant 0 : index
    %c0_25 = arith.constant 0 : index
    %51 = vector.load %arg6[%c0_23, %c0_24, %c0_25] : memref<1x4x256xf32, #tpu.memory_space<vmem>>, vector<1x4x256xf32>
    %52 = vector.shape_cast %51 : vector<1x4x256xf32> to vector<4x256xf32>
    %53 = vector.shape_cast %50 : vector<4x256xf32> to vector<1x4x256xf32>
    tpu.vector_store %arg6[%c0_23, %c0_24, %c0_25], %53 {strides = array<i32>} : memref<1x4x256xf32, #tpu.memory_space<vmem>>, vector<1x4x256xf32>,
    return
  }
  func.func @transform_0(%arg0: i32) -> (i32, i32, i32) {
    %c0_i32 = arith.constant 0 : i32
    %c0_i32_0 = arith.constant 0 : i32
    %c0_i32_1 = arith.constant 0 : i32
    return %arg0, %c0_i32, %c0_i32_0 : i32, i32, i32
  }
  func.func @transform_1(%arg0: i32) -> (i32, i32, i32) {
    %c0_i32 = arith.constant 0 : i32
    %c0_i32_0 = arith.constant 0 : i32
    %c0_i32_1 = arith.constant 0 : i32
    return %arg0, %c0_i32, %c0_i32_0 : i32, i32, i32
  }
  func.func @transform_2(%arg0: i32) -> (i32, i32) {
    %c0_i32 = arith.constant 0 : i32
    %c0_i32_0 = arith.constant 0 : i32
    %c0_i32_1 = arith.constant 0 : i32
    return %c0_i32, %c0_i32_0 : i32, i32
  }
  func.func @transform_3(%arg0: i32) -> (i32, i32, i32) {
    %c0_i32 = arith.constant 0 : i32
    %c0_i32_0 = arith.constant 0 : i32
    %c0_i32_1 = arith.constant 0 : i32
    return %arg0, %c0_i32, %c0_i32_0 : i32, i32, i32
  }
  func.func @transform_4(%arg0: i32) -> (i32, i32, i32) {
    %c0_i32 = arith.constant 0 : i32
    %c0_i32_0 = arith.constant 0 : i32
    %c0_i32_1 = arith.constant 0 : i32
    return %arg0, %c0_i32, %c0_i32_0 : i32, i32, i32
  }
  func.func @transform_5(%arg0: i32) -> (i32, i32, i32) {
    %c0_i32 = arith.constant 0 : i32
    %c0_i32_0 = arith.constant 0 : i32
    %c0_i32_1 = arith.constant 0 : i32
    return %arg0, %c0_i32, %c0_i32_0 : i32, i32, i32
  }
}

</mosaic_0001>

<bundles_post_ra>
// kernel: tpu_custom_call.1
= control target key start
LH: loop header
LB: loop body
LE: loop exit
PB: predicated region body
PF: predicated region fallthrough
CT: control target
= control target key end

     0   :  { %10 = vsyncpa [#allocation3], 0  ;;  %s828_s0 = inlined_call_operand.vmem [shape: f32[2,4,256], index: 0, kind: input, shape index: {}]   ;;  %s829_s1 = inlined_call_operand.vmem [shape: f32[2,1,256], index: 1, kind: input, shape index: {}]   ;;  %s830_s2 = inlined_call_operand.vmem [shape: f32[4,1], index: 2, kind: input, shape index: {}]   ;;  %s831_s3 = inlined_call_operand.vmem [shape: f32[2,4,1], index: 3, kind: input, shape index: {}]   ;;  %s832_s4 = inlined_call_operand.vmem [shape: f32[2,4,1], index: 4, kind: input, shape index: {}]   ;;  %s833_s5 = inlined_call_operand.hbm [shape: f32[2,4,256], index: 5, kind: output, shape index: {}]  }
   0x1   :  { %12 = vsyncpa [#allocation3 + $0x1], 0  ;;  %s712_s18 = smov 0   ;;  %s714_s19 = smov 0  }
   0x2   :  { %s716_s20 = smov 0   ;;  %s718_s21 = smov 0  }
   0x3 LB: > { %s733_s22 = sadd.s32 4294967295, %s676_s21   ;;  %s541_s23 = sadd.s32 4294967294, %s676_s21   ;;  %s676_s21 = sphi %s718_s21, %s839_s21   ;;  %s672_s20 = sphi %s716_s20, %s838_s20   ;;  %s668_s19 = sphi %s714_s19, %s837_s19   ;;  %s664_s18 = sphi %s712_s18, %s836_s18  }
   0x4   : > { %s737_s24 = sadd.s32 1, %s676_s21   ;;  %s150_s25 = sadd.s32 1, %s672_s20 }
   0x5   : > { %s147_s26 = ssub.s32 %s676_s21, %s737_s24  ;;  %p160_p0 = scmp.ne.s32.totalorder %s672_s20, %s668_s19 }
   0x6   : > { %p148_p1 = scmp.eq.s32.totalorder %s147_s26, 0  ;;  %p161_p2 = scmp.eq.s32.totalorder %s733_s22, 1 }
   0x7   : > { %p166_p3 = scmp.ne.s32.totalorder %s668_s19, %s664_s18  ;;  %p167_p4 = scmp.eq.s32.totalorder %s541_s23, 1 }
   0x8   : > { %s748_s27 = scalar_select %p148_p1, %s672_s20, %s150_s25  }
   0x9   : > { %p750_p5 = por %p161_p2, %p160_p0  ;;  %p754_p6 = por %p167_p4, %p166_p3 }
   0xa   : > { %p544_p7 = scmp.ge.s32.totalorder %s676_s21, 1  ;;  %p217_p8 = scmp.lt.s32.totalorder %s676_s21, 3 }
   0xc   : > { %p218_p9 = pnand %p544_p7, %p217_p8 }
   0xd   : > { %p257_p10 = scmp.lt.s32.totalorder (!%p218_p9), %s733_s22, 1  ;;  %s557_s9 = sshll.u32 (!%p218_p9), %s733_s22, 3 }
   0xe   : > { %221 = sbr.rel (%p218_p9) target bundleno = 484 (0x1e4), region = 40  ;;  %s634_s26 = scalar_lea.hbm (!%p218_p9), %s833_s5, 16 }
  0x13   : > { %v275_v0 = vld [vmem:[%s830_s2] sm:$0xf]  ;;  %v678_v1 = vmov 0   ;;  %s765_s7 = scalar_select %p257_p10, %s733_s22, 1  ;;  %vm292_vm0 = vcmask 1043456   ;;  %v679_v11 = vmov 4.0  }
  0x14   : > { %601 = vset.pattern.permute.xlu0 %v678_v1  ;;  %602 = vset.pattern.permute.xlu1 %v678_v1  ;;  %604 = vrcp.f32 %v679_v11 }
  0x15   : > { %279 = vperm.xlu0 %601, %v275_v0   ;;  %603 = vset.pattern.permute.xlu2 %v678_v1  ;;  %s548_s8 = sshll.u32 %s765_s7, 1  ;;  %s556_s12 = sshll.u32 %s765_s7, 3 }
  0x16   : > { %s265_s11 = scalar_lea.vmem %s829_s1, %s548_s8  ;;  %s261_s15 = scalar_lea.vmem %s828_s0, %s556_s12 }
  0x17   : > { %v276_v2 = vld [vmem:[%s265_s11] sm:$0x3]  ;;  %s549_s16 = sshll.u32 %s765_s7, 2  ;;  %s254_s7 = sand.u32 1, %s668_s19  }
  0x18   : > { %v284_v3 = vperm.slane %v276_v2, 1  ;;  %v283_v4 = vperm.slane %v276_v2, 0  ;;  %v274_v7 = vld [vmem:[%s261_s15] sm:$0xff]  ;;  %s269_s25 = scalar_lea.vmem %s831_s3, %s549_s16  ;;  %s273_s6 = scalar_lea.vmem %s832_s4, %s549_s16 }
  0x19   : > { %s545_s8 = sshll.u32 %s254_s7, 3  ;;  %s441_s12 = scalar_lea.hbm %s833_s5, %s557_s9 }
  0x1a   : > { %v605_v16 = vpop.eup %604  ;;  %s256_s13 = scalar_lea.vmem [#allocation2], %s545_s8  ;;  %s445_s15 = sshll.u32 %s441_s12, 4  ;;  %s446_s15 = int_to_ptr.hbm [resolvable:$true] %s445_s15 }
  0x1b   : > { %v321_v17 = vmul.f32 4.0, %v605_v16  ;;  %vm325_vm2 = vweird.f32 %v605_v16  ;;  %s443_s14 = sshll.u32 %s256_s13, 4  ;;  %s430_s22 = scalar_lea.sflag [#allocation3], %s254_s7  ;;  %s444_s14 = int_to_ptr.vmem [resolvable:$true] %s443_s14 }
  0x1c   : > { %s628_s16 = sshra.s32 %s446_s15, 4  ;;  %s629_s16 = int_to_ptr.hbm [resolvable:$true] %s628_s16 }
  0x1d   : > { %v322_v18 = vsub.f32 1.0, %v321_v17  ;;  %s630_s17 = scalar_lea.hbm %s629_s16, 8  ;;  %p635_p0 = scmp.lt.s32.totalorder %s629_s16, %s833_s5 }
  0x1e   : > { %p631_p11 = scmp.ne.s32.totalorder %s629_s16, %s630_s17  ;;  %p636_p1 = scmp.lt.s32.totalorder %s634_s26, %s630_s17 }
  0x1f   : > { %v323_v25 = vmul.f32 %v605_v16, %v322_v18 }
  0x20   : > { %p632_p12 = pnand %p631_p11, %p750_p5  ;;  %p637_p2 = por %p636_p1, %p635_p0 }
  0x21   : > { %v324_v30 = vadd.f32 %v605_v16, %v323_v25 }
  0x22   : > { %p633_p13 = pneg %p632_p12 }
  0x23   : > { %v326_v35 = vsel %vm325_vm2, %v605_v16, %v324_v30  ;;  %v358_v30 = vld [vmem:[%s273_s6] sm:$0xf] }
  0x24   : > { %p638_p3 = pnand %p637_p2, %p633_p13 }
  0x87   : > { %v280_v5 = vpop.permute.xlu0 %279 }
  0x88   : > { %v288_v6 = vmul.f32 %v284_v3, %v280_v5  ;;  %v287_v8 = vmul.f32 %v283_v4, %v280_v5 }
  0x8a   : > { %v291_v9 = vrot.slane %v288_v6, 4  ;;  %v680_v6 = vmov 256.0  }
  0x8c   : > { %v293_v10 = vsel %vm292_vm0, %v287_v8, %v291_v9 }
  0x8d   : > { %v295_v12 = vadd.f32 %v293_v10, %v274_v7 }
  0x8f   : > { %vm296_vm1 = vcmp.ge.f32.partialorder %v295_v12, 0.0  ;;  %v297_v13 = vmul.f32 0.2, %v295_v12 }
  0x91   : > { %v298_v14 = vsel %vm296_vm1, %v295_v12, %v297_v13 }
  0x92   : > { %v299_v15 = vmul.f32 %v298_v14, %v298_v14 }
  0x94   : > { %301 = vst [vmem:[#allocation1] ss:$2 sm:$0xff] %v299_v15 }
  0x9b   : > { %v302_v19 = vld.sshfl [vmem:[#allocation1] sm:$0xff pattern:$0x75316420]  ;;  %v303_v20 = vld.sshfl [vmem:[#allocation1 + $0x8] sm:$0xff pattern:$0x75316420] }
  0x9c   : > { %v306_v21 = vsel %vm292_vm0, %v302_v19, 0.0  ;;  %v313_v22 = vsel %vm292_vm0, %v303_v20, 0.0 }
  0x9d   : > { %v307_v23 = vrot.slane %v306_v21, 4  ;;  %v314_v24 = vrot.slane %v313_v22, 4 }
  0x9f   : > { %v308_v26 = vadd.f32 %v307_v23, %v306_v21  ;;  %v315_v27 = vadd.f32 %v314_v24, %v313_v22 }
  0xa1   : > { %v309_v28 = vrot.slane %v308_v26, 2  ;;  %v316_v29 = vrot.slane %v315_v27, 2 }
  0xa3   : > { %v310_v31 = vadd.f32 %v309_v28, %v308_v26  ;;  %v317_v32 = vadd.f32 %v316_v29, %v315_v27  ;;  %v357_v26 = vld [vmem:[%s269_s25] sm:$0xf] }
  0xa5   : > { %v311_v33 = vrot.slane %v310_v31, 1  ;;  %v318_v34 = vrot.slane %v317_v32, 1 }
  0xa7   : > { %v312_v36 = vadd.f32 %v311_v33, %v310_v31  ;;  %v319_v37 = vadd.f32 %v318_v34, %v317_v32  ;;  %v681_v33 = vmov 839922192  }
  0xa8   : > { %v413_v34 = vunpack.c.l.s4 %v681_v33 }
  0xa9   : > { %v327_v38 = vmul.f32 %v326_v35, %v312_v36  ;;  %v328_v39 = vmul.f32 %v326_v35, %v319_v37 }
  0xaa   : > { %v414_v35 = vunpack.c.0.s8 %v413_v34 }
  0xab   : > { %v329_v40 = vadd.f32 1e-08, %v327_v38  ;;  %v330_v41 = vadd.f32 1e-08, %v328_v39 }
  0xad   : > { %606 = vrsqrt.f32 %v329_v40  ;;  %vm347_vm5 = vweird.f32 %v330_v41  ;;  %vm337_vm7 = vweird.f32 %v329_v40 }
  0xae   : > { %608 = vrsqrt.f32 %v330_v41 }
  0xaf   : > { %610 = vrcp.f32 %v680_v6 }
  0xb3   : > { %v607_v42 = vpop.eup %606 }
  0xb4   : > { %v609_v43 = vpop.eup %608  ;;  %v332_v44 = vmul.f32 %v607_v42, %v329_v40  ;;  %vm338_vm4 = vweird.f32 %v607_v42 }
  0xb5   : > { %v342_v45 = vmul.f32 %v609_v43, %v330_v41  ;;  %vm348_vm3 = vweird.f32 %v609_v43  ;;  %vm339_vm8 = vmor %vm337_vm7, %vm338_vm4  ;;  %v611_v7 = vpop.eup %610 }
  0xb6   : > { %v333_v46 = vmul.f32 %v607_v42, %v332_v44  ;;  %vm349_vm6 = vmor %vm347_vm5, %vm348_vm3  ;;  %v371_v8 = vmul.f32 256.0, %v611_v7  ;;  %vm375_vm9 = vweird.f32 %v611_v7 }
  0xb7   : > { %v343_v47 = vmul.f32 %v609_v43, %v342_v45 }
  0xb8   : > { %v334_v48 = vmul.f32 0.5, %v333_v46  ;;  %v372_v9 = vsub.f32 1.0, %v371_v8 }
  0xb9   : > { %v344_v49 = vmul.f32 0.5, %v343_v47 }
  0xba   : > { %v335_v50 = vsub.f32 1.5, %v334_v48  ;;  %v373_v10 = vmul.f32 %v611_v7, %v372_v9 }
  0xbb   : > { %v345_v51 = vsub.f32 1.5, %v344_v49 }
  0xbc   : > { %v336_v52 = vmul.f32 %v607_v42, %v335_v50  ;;  %v374_v11 = vadd.f32 %v611_v7, %v373_v10 }
  0xbd   : > { %v346_v53 = vmul.f32 %v609_v43, %v345_v51 }
  0xbe   : > { %v340_v56 = vsel %vm339_vm8, %v607_v42, %v336_v52  ;;  %v376_v12 = vsel %vm375_vm9, %v611_v7, %v374_v11 }
  0xbf   : > { %v350_v54 = vsel %vm349_vm6, %v609_v43, %v346_v53 }
  0xc0   : > { %v353_v55 = vrot.slane %v350_v54, 4 }
  0xc2   : > { %v354_v57 = vsel %vm292_vm0, %v340_v56, %v353_v55 }
  0xc3   : > { %v779_v58 = vmul.f32 %v354_v57, %v298_v14 }
  0xc5   : > { %360 = vst [vmem:[#allocation1] ss:$2 sm:$0xff] %v779_v58  ;;  %v378_v59 = vmul.f32 %v779_v58, %v779_v58 }
  0xcc   : > { %v361_v60 = vld.sshfl [vmem:[#allocation1] sm:$0xff pattern:$0x75316420]  ;;  %v362_v61 = vld.sshfl [vmem:[#allocation1 + $0x8] sm:$0xff pattern:$0x75316420] }
  0xcd   : > { %v365_v62 = vsel %vm292_vm0, %v361_v60, 0.0  ;;  %v366_v63 = vsel %vm292_vm0, %v362_v61, 0.0  ;;  %380 = vst [vmem:[#allocation1] ss:$2 sm:$0xff] %v378_v59 }
  0xce   : > { %v367_v0 = vadd.f32 %v366_v63, %v365_v62 }
  0xd0   : > { %368 = vadd.xlane.f32.xlu0 %v367_v0 }
  0xd4   : > { %v381_v1 = vld.sshfl [vmem:[#allocation1] sm:$0xff pattern:$0x75316420]  ;;  %v382_v2 = vld.sshfl [vmem:[#allocation1 + $0x8] sm:$0xff pattern:$0x75316420] }
  0xd5   : > { %v385_v3 = vsel %vm292_vm0, %v381_v1, 0.0  ;;  %v386_v4 = vsel %vm292_vm0, %v382_v2, 0.0 }
  0xd6   : > { %v387_v5 = vadd.f32 %v386_v4, %v385_v3 }
  0xd8   : > { %388 = vadd.xlane.f32.xlu1 %v387_v5 }
 0x143   : > { %v369_v13 = vpop.xlane.xlu0 %368 }
 0x144   : > { %v377_v14 = vmul.f32 %v376_v12, %v369_v13 }
 0x146   : > { %v391_v16 = vmul.f32 %v377_v14, %v377_v14 }
 0x14b   : > { %v389_v15 = vpop.xlane.xlu1 %388 }
 0x14c   : > { %v390_v17 = vmul.f32 %v389_v15, %v376_v12 }
 0x14e   : > { %v392_v18 = vsub.f32 %v390_v17, %v391_v16 }
 0x150   : > { %v393_v19 = vmax.f32 %v392_v18, 0.0 }
 0x152   : > { %v394_v20 = vadd.f32 1e-08, %v393_v19 }
 0x154   : > { %612 = vrsqrt.f32 %v394_v20  ;;  %vm401_vm11 = vweird.f32 %v394_v20 }
 0x15a   : > { %v613_v21 = vpop.eup %612 }
 0x15b   : > { %v396_v22 = vmul.f32 %v613_v21, %v394_v20  ;;  %vm402_vm10 = vweird.f32 %v613_v21 }
 0x15c   : > { %vm403_vm12 = vmor %vm401_vm11, %vm402_vm10 }
 0x15d   : > { %v397_v23 = vmul.f32 %v613_v21, %v396_v22 }
 0x15f   : > { %v398_v24 = vmul.f32 0.5, %v397_v23 }
 0x161   : > { %v399_v25 = vsub.f32 1.5, %v398_v24 }
 0x163   : > { %v400_v27 = vmul.f32 %v613_v21, %v399_v25 }
 0x165   : > { %v404_v28 = vsel %vm403_vm12, %v613_v21, %v400_v27 }
 0x166   : > { %v405_v29 = vmul.f32 %v404_v28, %v357_v26 }
 0x168   : > { %410 = vperm.xlu1 %602, %v405_v29   ;;  %v406_v31 = vmul.f32 %v405_v29, %v377_v14 }
 0x16a   : > { %v407_v32 = vsub.f32 %v358_v30, %v406_v31 }
 0x16c   : > { %420 = vperm.xlu2 %603, %v407_v32  }
 0x1c6   : > { %v421_v36 = vpop.permute.xlu2 %420 }
 0x1c7   : > { %v425_v39 = vperm.slane %v421_v36, %v414_v35 }
 0x1da   : > { %v411_v37 = vpop.permute.xlu1 %410 }
 0x1db   : > { %v415_v38 = vperm.slane %v411_v37, %v414_v35 }
 0x1dd   : > { %v417_v40 = vmul.f32 %v415_v38, %v779_v58 }
 0x1df   : > { %v427_v41 = vadd.f32 %v425_v39, %v417_v40 }
 0x1e1   : > { %428 = vst [vmem:[%s256_s13] sm:$0xff] %v427_v41 }
 0x1e2   : > { %641 = shalt.err (!%p638_p3)
}
 0x1e3   : > { %558 = dma.vmem_to_hbm [thread:$0]  (%p750_p5), %s444_s14, 128, %s446_s15, %s430_s22  }
 0x1e4 PF: > { %p564_p4 = scmp.ge.s32.totalorder %s676_s21, 2  ;;  %s457_s7 = sand.u32 1, %s664_s18  }
 0x1e5   : > { %s458_s8 = scalar_lea.sflag [#allocation3], %s457_s7 }
 0x1e6   : > { %p561_p7 = pnand %p564_p4, %p754_p6 }
 0x1e8   : > { %p562_p8 = pneg %p561_p7 }
 0x1ea   : > { %659 = dma.done.wait (%p562_p8), %s458_s8, 128  }
 0x1eb   : > { %661 = vsyncadd (%p562_p8), %s458_s8, 4294967168  ;;  %p15_p9 = scmp.ge.s32.totalorder %s737_s24, 4   ;;  %s836_s18 = smov %s668_s19 }
 0x1ec   : > { %s837_s19 = smov %s672_s20  ;;  %s838_s20 = smov %s748_s27 }
 0x1ed   : > { %s839_s21 = smov %s737_s24  ;;  %17 = sbr.rel (!%p15_p9) target bundleno = 3 (0x3), region = 84 }
 0x1f2   :  { %464 = vsyncpa [#allocation3], 1 }
 0x1f3   :  { %466 = vsyncpa [#allocation3 + $0x1], 1 }

</bundles_post_ra>
